<compile_context>
chip_gen: v7x
topology: tpu7x:2x2x1
jax: 0.10.0
libtpu: 0.0.40
codegen_flags: <defaults>
</compile_context>

<pallas_src>
import jax
import jax.numpy as jnp
from jax.experimental import pallas as pl
from jax.experimental.pallas import tpu as pltpu

_LANE = 128


def _make_kernel(use_mxu):
    if use_mxu:
        def kernel(x_ref, mask_ref, w_ref, b_ref, out_ref):
            # x_ref: (TM, H) native sub-f32; w_ref: (H, 1) in the same dtype.
            # MXU matvec with exact f32 accumulation; no full-tile f32 cast.
            h = jnp.dot(x_ref[...], w_ref[...],
                        preferred_element_type=jnp.float32)          # (TM, 1)
            h = jnp.transpose(h) + b_ref[0]                          # (1, TM) lane-dense
            out_ref[...] = jax.nn.sigmoid(h) * mask_ref[...]
    else:
        def kernel(x_ref, mask_ref, w_ref, b_ref, out_ref):
            # x_ref: (TM, H) f32; w_ref: (1, H) f32 (broadcast over rows).
            xf = x_ref[...].astype(jnp.float32)
            h = jnp.sum(xf * w_ref[...], axis=-1, keepdims=True)     # VPU mul + XLU reduce
            h = jnp.transpose(h) + b_ref[0]                          # (1, TM) lane-dense
            out_ref[...] = jax.nn.sigmoid(h) * mask_ref[...]
    return kernel


def _vmem_budget():
    """Returns (scoped-VMEM ceiling in bytes, is_small_vmem_chip)."""
    phys = None
    try:
        info = pltpu.get_tpu_info()
        for name in ("vmem_capacity_bytes", "vmem_size_bytes", "vmem_bytes"):
            v = getattr(info, name, None)
            if v:
                phys = int(v)
                break
    except Exception:
        phys = None
    if phys is None:
        # Unknown part: assume the smallest VMEM (v7x, 64 MiB) and stay conservative.
        return 48 * 1024 * 1024, False
    small = phys <= 64 * 1024 * 1024                     # v7x-like (64 MiB per TC)
    ceiling = min((phys * 3) // 4, 100 * 1024 * 1024)    # ~48 MB v7x, ~96 MB v5e/v6e
    return int(ceiling), small


def classifier_forward(x, mask_cls, weight, bias, *, tm=4096):
    """x: [B,S,H] float (f32/bf16/...), mask_cls: [B,S], weight: [1,H] or [H],
    bias: [1] -> sentence scores [B,S] f32."""
    B, S, H = x.shape
    n_rows = B * S
    itemsize = jnp.dtype(x.dtype).itemsize
    use_mxu = jnp.issubdtype(x.dtype, jnp.floating) and itemsize < 4

    xf = x.reshape(n_rows, H)                               # native dtype: no extra HBM pass
    mf = mask_cls.astype(jnp.float32).reshape(1, n_rows)    # tiny, lane-dense
    w_flat = weight.reshape(-1)
    if use_mxu:
        w = w_flat.astype(x.dtype).reshape(H, 1)            # MXU RHS column
    else:
        w = w_flat.astype(jnp.float32).reshape(1, H)        # VPU broadcast row
    b = bias.astype(jnp.float32).reshape(1)

    vmem_ceiling, small_vmem = _vmem_budget()

    def working_set(rows, n_buf):
        # Pipelined x tiles + in-kernel f32 intermediates + small resident bits.
        stream = n_buf * rows * H * itemsize
        if use_mxu:
            interm = 8 * rows * 4                     # (rows,1)/(1,rows) f32 temporaries
        else:
            interm = 3 * rows * H * 4                 # f32 cast of tile + x*w product
        small = 6 * rows * 4 + 4 * H + (1 << 20)      # mask/out blocks, weight, slack
        return stream + interm + small

    # ---- tile-size selection -------------------------------------------------
    if n_rows <= _LANE:
        tm_eff = n_rows                                      # one full block (always legal)
    else:
        tm_eff = min(tm, n_rows)
        if n_rows >= 8 * 1024:
            # keep >= ~8 grid steps on big inputs so the DMA pipeline stays busy
            tm_eff = min(tm_eff, max(1024, n_rows // 8))
        if tm_eff < n_rows:
            tm_eff = max(_LANE, (tm_eff // _LANE) * _LANE)   # lane/sublane aligned tile
        # shrink until pipelined tiles + f32 intermediates fit the scoped-VMEM ceiling
        while tm_eff > _LANE and working_set(tm_eff, 2) > vmem_ceiling:
            aligned = (tm_eff // _LANE) * _LANE
            tm_eff = max(_LANE, aligned - _LANE if aligned == tm_eff else aligned)

    n_blocks = int(pl.cdiv(n_rows, tm_eff))

    # Triple-buffer the x stream on v7x-like parts when there is VMEM headroom.
    x_buffers = 2
    if small_vmem and n_blocks > 3 and working_set(tm_eff, 3) <= vmem_ceiling:
        x_buffers = 3

    vmem_limit = int(min(vmem_ceiling,
                         max(32 * 1024 * 1024,
                             working_set(tm_eff, x_buffers) + (4 << 20))))

    x_index = lambda i: (i, 0)
    if x_buffers == 3:
        try:
            x_spec = pl.BlockSpec((tm_eff, H), x_index, pipeline_mode=pl.Buffered(3))
        except TypeError:  # BlockSpec without pipeline_mode support
            x_spec = pl.BlockSpec((tm_eff, H), x_index)
    else:
        x_spec = pl.BlockSpec((tm_eff, H), x_index)

    if use_mxu:
        w_spec = pl.BlockSpec((H, 1), lambda i: (0, 0))
    else:
        w_spec = pl.BlockSpec((1, H), lambda i: (0, 0))

    out = pl.pallas_call(
        _make_kernel(use_mxu),
        out_shape=jax.ShapeDtypeStruct((1, n_blocks * tm_eff), jnp.float32),
        grid_spec=pltpu.PrefetchScalarGridSpec(
            num_scalar_prefetch=0,
            grid=(n_blocks,),
            in_specs=[
                x_spec,                                             # x row tile (native dtype)
                pl.BlockSpec((1, tm_eff), lambda i: (0, i)),        # mask (lane-dense)
                w_spec,                                             # resident weight
                pl.BlockSpec(memory_space=pltpu.MemorySpace.SMEM),  # bias scalar
            ],
            out_specs=pl.BlockSpec((1, tm_eff), lambda i: (0, i)),  # flat lane-dense scores
        ),
        compiler_params=pltpu.CompilerParams(
            dimension_semantics=("parallel",),
            vmem_limit_bytes=vmem_limit),
    )(xf, mf, w, b)

    # The last partial block's tail is unspecified (padded edge-block reads);
    # this slice MUST remain to discard it before restoring [B, S].
    return out[0, :n_rows].reshape(B, S)


def _reference(x, mask_cls, weight, bias):
    w = weight.astype(jnp.float32).reshape(-1)
    b = bias.astype(jnp.float32).reshape(-1)[0]
    h = jnp.sum(x.astype(jnp.float32) * w, axis=-1) + b
    return jax.nn.sigmoid(h) * mask_cls.astype(jnp.float32)


if __name__ == "__main__":
    key = jax.random.PRNGKey(0)

    # --- Case 1: module-spec shapes (f32, single block, VPU path) ---
    B, S, H = 2, 8, 32
    kx, km, kw, kb, key = jax.random.split(key, 5)
    x = jax.random.normal(kx, (B, S, H), dtype=jnp.float32)
    mask_cls = (jax.random.uniform(km, (B, S)) > 0.3).astype(jnp.float32)
    weight = jax.random.normal(kw, (1, H), dtype=jnp.float32) * 0.1   # nn.Linear(H, 1).weight
    bias = jax.random.normal(kb, (1,), dtype=jnp.float32) * 0.1       # nn.Linear(H, 1).bias

    out1 = jax.block_until_ready(classifier_forward(x, mask_cls, weight, bias))
    ref1 = _reference(x, mask_cls, weight, bias)
    assert out1.shape == (B, S)
    assert jnp.allclose(out1, ref1, atol=1e-5, rtol=1e-5)

    # --- Case 2: bf16 input, multi-block grid with partial last tile (MXU path) ---
    B2, S2, H2 = 3, 400, 128
    kx, km, kw, kb, key = jax.random.split(key, 5)
    x2 = jax.random.normal(kx, (B2, S2, H2), dtype=jnp.float32).astype(jnp.bfloat16)
    mask2 = (jax.random.uniform(km, (B2, S2)) > 0.3).astype(jnp.float32)
    w2 = jax.random.normal(kw, (1, H2), dtype=jnp.float32) * 0.1
    b2 = jax.random.normal(kb, (1,), dtype=jnp.float32) * 0.1

    out2 = jax.block_until_ready(classifier_forward(x2, mask2, w2, b2, tm=256))
    ref2 = _reference(x2, mask2, w2, b2)
    assert out2.shape == (B2, S2)
    # bf16 weight cast on the MXU path -> bf16-level tolerance vs the f32 reference
    assert jnp.allclose(out2, ref2, atol=1e-2, rtol=1e-2)

    # --- Case 3: f32 input, multi-block grid with partial last tile (VPU path) ---
    out3 = jax.block_until_ready(
        classifier_forward(x2.astype(jnp.float32), mask2, w2, b2, tm=512))
    ref3 = _reference(x2.astype(jnp.float32), mask2, w2, b2)
    assert out3.shape == (B2, S2)
    assert jnp.allclose(out3, ref3, atol=1e-5, rtol=1e-5)

    print("KERNEL_OK")
</pallas_src>

<mosaic_0001>
module attributes {stable_mosaic.version = 11 : i64} {
  func.func @kernel(%arg0: i32, %arg1: memref<16x32xf32, #tpu.memory_space<vmem>>, %arg2: memref<1x16xf32, #tpu.memory_space<vmem>>, %arg3: memref<1x32xf32, #tpu.memory_space<vmem>>, %arg4: memref<1xf32, #tpu.memory_space<smem>>, %arg5: memref<1x16xf32, #tpu.memory_space<vmem>>) attributes {dimension_semantics = [#tpu.dimension_semantics<parallel>], iteration_bounds = array<i64: 1>, scalar_prefetch = 0 : i64, scratch_operands = 0 : i64, tpu.core_type = #tpu.core_type<tc>, window_params = [{transform_indices = @transform_0, window_bounds = array<i64: 16, 32>}, {transform_indices = @transform_1, window_bounds = array<i64: 1, 16>}, {pipeline_mode = #tpu.pipeline_mode<synchronous>, transform_indices = @transform_2, window_bounds = array<i64: 1, 32>}, {transform_indices = @transform_3, window_bounds = array<i64: 1>}, {transform_indices = @transform_4, window_bounds = array<i64: 1, 16>}]} {
    %c0 = arith.constant 0 : index
    %c0_0 = arith.constant 0 : index
    %0 = vector.load %arg1[%c0, %c0_0] : memref<16x32xf32, #tpu.memory_space<vmem>>, vector<16x32xf32>
    %c0_1 = arith.constant 0 : index
    %c0_2 = arith.constant 0 : index
    %1 = vector.load %arg3[%c0_1, %c0_2] : memref<1x32xf32, #tpu.memory_space<vmem>>, vector<1x32xf32>
    %2 = vector.broadcast %1 : vector<1x32xf32> to vector<16x32xf32>
    %3 = arith.mulf %0, %2 : vector<16x32xf32>
    %cst = arith.constant dense<0.000000e+00> : vector<16xf32>
    %4 = vector.multi_reduction <add>, %3, %cst [1] : vector<16x32xf32> to vector<16xf32>
    %5 = vector.shape_cast %4 : vector<16xf32> to vector<16x1xf32>
    %6 = tpu.transpose %5, [1, 0] : vector<16x1xf32> -> vector<1x16xf32>
    %c0_3 = arith.constant 0 : index
    %7 = memref.load %arg4[%c0_3] : memref<1xf32, #tpu.memory_space<smem>>
    %8 = vector.broadcast %7 : f32 to vector<1x16xf32>
    %9 = arith.addf %6, %8 : vector<1x16xf32>
    %10 = arith.negf %9 : vector<1x16xf32>
    %11 = math.exp %10 : vector<1x16xf32>
    %cst_4 = arith.constant 1.000000e+00 : f32
    %12 = vector.broadcast %cst_4 : f32 to vector<1x16xf32>
    %13 = arith.addf %12, %11 : vector<1x16xf32>
    %14 = arith.divf %12, %13 : vector<1x16xf32>
    %c0_5 = arith.constant 0 : index
    %c0_6 = arith.constant 0 : index
    %15 = vector.load %arg2[%c0_5, %c0_6] : memref<1x16xf32, #tpu.memory_space<vmem>>, vector<1x16xf32>
    %16 = arith.mulf %14, %15 : vector<1x16xf32>
    %c0_7 = arith.constant 0 : index
    %c0_8 = arith.constant 0 : index
    %17 = vector.load %arg5[%c0_7, %c0_8] : memref<1x16xf32, #tpu.memory_space<vmem>>, vector<1x16xf32>
    tpu.vector_store %arg5[%c0_7, %c0_8], %16 {strides = array<i32>} : memref<1x16xf32, #tpu.memory_space<vmem>>, vector<1x16xf32>,
    return
  }
  func.func @transform_0(%arg0: i32) -> (i32, i32) {
    %c0_i32 = arith.constant 0 : i32
    %c0_i32_0 = arith.constant 0 : i32
    return %arg0, %c0_i32 : i32, i32
  }
  func.func @transform_1(%arg0: i32) -> (i32, i32) {
    %c0_i32 = arith.constant 0 : i32
    %c0_i32_0 = arith.constant 0 : i32
    return %c0_i32, %arg0 : i32, i32
  }
  func.func @transform_2(%arg0: i32) -> (i32, i32) {
    %c0_i32 = arith.constant 0 : i32
    %c0_i32_0 = arith.constant 0 : i32
    %c0_i32_1 = arith.constant 0 : i32
    return %c0_i32, %c0_i32_0 : i32, i32
  }
  func.func @transform_3(%arg0: i32) -> i32 {
    %c0_i32 = arith.constant 0 : i32
    %c0_i32_0 = arith.constant 0 : i32
    return %c0_i32 : i32
  }
  func.func @transform_4(%arg0: i32) -> (i32, i32) {
    %c0_i32 = arith.constant 0 : i32
    %c0_i32_0 = arith.constant 0 : i32
    return %c0_i32, %arg0 : i32, i32
  }
}

</mosaic_0001>

<bundles_post_ra>
// kernel: tpu_custom_call.1
= control target key start
LH: loop header
LB: loop body
LE: loop exit
PB: predicated region body
PF: predicated region fallthrough
CT: control target
= control target key end

     0   :  { %10 = vsyncpa [#allocation4], 0  ;;  %s232_s0 = inlined_call_operand.hbm [shape: f32[16,32], index: 0, kind: input, shape index: {}]   ;;  %s233_s1 = inlined_call_operand.vmem [shape: f32[1,16], index: 1, kind: input, shape index: {}]   ;;  %s234_s2 = inlined_call_operand.vmem [shape: f32[1,32], index: 2, kind: input, shape index: {}]   ;;  %s235_s3 = inlined_call_operand.<no memory space> [shape: f32[1], index: 3, kind: input, shape index: {}]   ;;  %s236_s4 = inlined_call_operand.hbm [shape: f32[1,16], index: 4, kind: output, shape index: {}]  }
   0x1   :  { %11 = vsyncpa [#allocation5], 0  ;;  %s170_s15 = smov [#allocation3]   ;;  %s122_s19 = scalar_lea.hbm %s232_s0, 256 }
   0x2   :  { %s17_s16 = sshll.u32 %s170_s15, 4  ;;  %p123_p0 = scmp.ne.s32.totalorder %s232_s0, %s122_s19  ;;  %s18_s16 = int_to_ptr.vmem [resolvable:$true] %s17_s16 }
   0x3   :  { %p126_p1 = scmp.lt.u32.totalorder %s122_s19, %s232_s0 }
   0x5   :  { %p128_p2 = pnand %p126_p1, %p123_p0 }
   0x7   :  { %131 = shalt.err (!%p128_p2)
}
   0x8   :  { %s132_s24 = scalar_lea.vmem %s18_s16, 256  ;;  %p137_p4 = scmp.lt.s32.totalorder %s18_s16, %s18_s16 }
   0x9   :  { %p133_p3 = scmp.ne.s32.totalorder %s18_s16, %s132_s24  ;;  %p138_p5 = scmp.lt.s32.totalorder %s132_s24, %s132_s24 }
   0xb   :  { %p139_p6 = por %p138_p5, %p137_p4 }
   0xd   :  { %p140_p7 = pnand %p139_p6, %p133_p3 }
   0xf   :  { %143 = shalt.err (!%p140_p7)
}
  0x10   :  { %s171_s25 = smov 128   ;;  %s172_s26 = smov 8  }
  0x11   :  { %23 = dma.hbm_to_vmem [thread:$0]  %s232_s0, 256, %s18_s16, [#allocation4], %s171_s25, %s171_s25, %s172_s26  }
  0x12   :  { %166 = dma.done.wait [#allocation4], 256  }
  0x13   :  { %167 = vsyncadd [#allocation4], 4294967040  ;;  %v33_v0 = vld [vmem:[#allocation3] sm:$0xff]  ;;  %vm44_vm0 = vcmask 261120   ;;  %v34_v2 = vld [vmem:[#allocation3 + $0x8] sm:$0xff]  ;;  %v84_v9 = vstv %s235_s3  ;;  %s173_s7 = smov [#allocation6]  }
  0x14   :  { %v111_v1 = vld [vmem:[%s234_s2] ss:$0 sm:$0xff]  ;;  %s102_s8 = sshll.u32 %s173_s7, 4  ;;  %vm94_vm1 = vcmask 122880   ;;  %s103_s8 = int_to_ptr.vmem [resolvable:$true] %s102_s8 }
  0x15   :  { %v42_v3 = vmul.f32 %v111_v1, %v33_v0  ;;  %v43_v4 = vmul.f32 %v111_v1, %v34_v2  ;;  %v92_v15 = vld [vmem:[%s233_s1] sm:$0x1]  ;;  %s144_s9 = scalar_lea.vmem %s103_s8, 16  ;;  %s148_s3 = scalar_lea.vmem %s103_s8, 32 }
  0x16   :  { %p145_p8 = scmp.ne.s32.totalorder %s103_s8, %s144_s9  ;;  %p149_p9 = scmp.lt.s32.totalorder %s103_s8, %s103_s8 }
  0x17   :  { %v45_v5 = vsel %vm44_vm0, %v42_v3, 0.0  ;;  %v48_v6 = vsel %vm44_vm0, %v43_v4, 0.0  ;;  %p150_p10 = scmp.lt.s32.totalorder %s148_s3, %s144_s9 }
  0x18   :  { %46 = vadd.xlane.f32.xlu0 %v45_v5 }
  0x19   :  { %p151_p11 = por %p150_p10, %p149_p9 }
  0x1b   :  { %p152_p12 = pnand %p151_p11, %p145_p8 }
  0x1c   :  { %49 = vadd.xlane.f32.xlu0 %v48_v6 }
  0xa5   :  { %v47_v7 = vpop.xlane.xlu0 %46 }
  0xa6   :  { %51 = vxpose.xlu1.b32.start [1/2] (short) (narrow) %v47_v7, 8 }
  0xa9   :  { %v50_v8 = vpop.xlane.xlu0 %49 }
  0xaa   :  { %52 = vxpose.xlu1.b32.end [2/2] (short) (narrow) %v50_v8, 8 }
 0x126   :  { %v67_v10 = vpop.trf.xlu1 }
 0x127   :  { %v85_v11 = vadd.f32 %v84_v9, %v67_v10 }
 0x129   :  { %v112_v12 = vmul.f32 -1.442695, %v85_v11 }
 0x12b   :  { %118 = vpow2.f32 %v112_v12 }
 0x135   :  { %v119_v13 = vpop.eup %118 }
 0x136   :  { %v89_v14 = vadd.f32 1.0, %v119_v13 }
 0x138   :  { %120 = vrcp.f32 %v89_v14 }
 0x142   :  { %v121_v16 = vpop.eup %120 }
 0x143   :  { %v93_v17 = vmul.f32 %v121_v16, %v92_v15 }
 0x145   :  { %95 = vst.msk [vmem:[#allocation6] sm:$0x1] %vm94_vm1, %v93_v17 }
 0x146   :  { %155 = shalt.err (!%p152_p12)
}
 0x147   :  { %s156_s12 = scalar_lea.hbm %s236_s4, 16 }
 0x148   :  { %p157_p13 = scmp.ne.s32.totalorder %s236_s4, %s156_s12  ;;  %p160_p0 = scmp.lt.u32.totalorder %s156_s12, %s236_s4 }
 0x14a   :  { %p162_p1 = pnand %p160_p0, %p157_p13 }
 0x14c   :  { %165 = shalt.err (!%p162_p1)
}
 0x14d   :  { %105 = dma.vmem_to_hbm [thread:$0]  %s103_s8, 16, %s236_s4, [#allocation5]  }
 0x14e   :  { %168 = dma.done.wait [#allocation5], 16  }
 0x14f   :  { %169 = vsyncadd [#allocation5], 4294967280 }
 0x150   :  { %109 = vsyncpa [#allocation4], 1 }
 0x151   :  { %110 = vsyncpa [#allocation5], 1 }

</bundles_post_ra>
